<compile_context>
chip_gen: v7x
topology: tpu7x:2x2x1
jax: 0.10.0
libtpu: 0.0.40
codegen_flags: <defaults>
</compile_context>

<pallas_src>
import math

import jax
import jax.numpy as jnp
import numpy as np
from jax.experimental import pallas as pl
from jax.experimental.pallas import tpu as pltpu


def _styled_conv_kernel(s_ref, p_ref, w_ref, b_ref, o_ref):
    # s_ref: (1, 1, K*K*Cin) f32   per-batch style, tiled K*K times (kk*Cin + c)
    # p_ref: (1, K*K*Cin, H*W) bf16  im2col patches for this batch element
    # w_ref: (Cout, K*K*Cin) f32   conv weight, conv_scale pre-folded
    # b_ref: (Cout, 1) f32         conv bias, conv_scale pre-folded
    # o_ref: (1, Cout, H*W)
    w_mod = (w_ref[...] * s_ref[0]).astype(jnp.bfloat16)            # (Cout, KKC)
    acc = jnp.dot(w_mod, p_ref[0],
                  preferred_element_type=jnp.float32)               # (Cout, HW) f32
    o_ref[0] = (acc + b_ref[...]).astype(o_ref.dtype)


def styled_conv(x_nchw, style, mod_w, mod_b, conv_w, conv_b):
    """StyledConv forward.  x_nchw: (B, Cin, H, W), style: (B, style_dim)."""
    B, Cin, H, W = x_nchw.shape
    Cout, _, K, _ = conv_w.shape
    Dstyle = style.shape[1]
    pad = K // 2
    HW = H * W
    KKC = K * K * Cin

    mod_scale = 1.0 / math.sqrt(Dstyle)          # EqualLinear scale (lr_mult=1)
    conv_scale = 1.0 / math.sqrt(Cin * K * K)    # StyledConv scale

    # EqualLinear hoisted: one tiny batched matmul for all B (review #9).
    s = style @ (mod_w * mod_scale).T + mod_b.reshape(1, Cin)       # (B, Cin) f32
    s_tiled = jnp.tile(s, (1, K * K)).reshape(B, 1, KKC)            # idx = kk*Cin + c

    # im2col layout plumbing (no FLOPs):
    # patches[b, (kh*K+kw)*Cin + c, h*W + w] = x_pad[b, c, h+kh, w+kw]
    x_pad = jnp.pad(x_nchw, ((0, 0), (0, 0), (pad, pad), (pad, pad)))
    taps = [x_pad[:, :, kh:kh + H, kw:kw + W]
            for kh in range(K) for kw in range(K)]
    patches = jnp.stack(taps, axis=1).reshape(B, KKC, HW).astype(jnp.bfloat16)

    # Conv weight flattened to (Cout, K*K*Cin); conv_scale folded into w and b.
    w_flat = (jnp.transpose(conv_w, (0, 2, 3, 1)).reshape(Cout, KKC)
              * conv_scale).astype(jnp.float32)
    b_col = (conv_b * conv_scale).reshape(Cout, 1).astype(jnp.float32)

    out = pl.pallas_call(
        _styled_conv_kernel,
        out_shape=jax.ShapeDtypeStruct((B, Cout, HW), x_nchw.dtype),
        grid=(B,),
        in_specs=[
            pl.BlockSpec((1, 1, KKC), lambda b: (b, 0, 0)),     # style (tiled)
            pl.BlockSpec((1, KKC, HW), lambda b: (b, 0, 0)),    # im2col patches
            pl.BlockSpec((Cout, KKC), lambda b: (0, 0)),        # conv weight
            pl.BlockSpec((Cout, 1), lambda b: (0, 0)),          # conv bias
        ],
        out_specs=pl.BlockSpec((1, Cout, HW), lambda b: (b, 0, 0)),
        compiler_params=pltpu.CompilerParams(
            dimension_semantics=("parallel",)),
    )(s_tiled, patches, w_flat, b_col)

    # (B, Cout, H*W) is already channel-major -> reshape straight to NCHW.
    return out.reshape(B, Cout, H, W)


def _reference(x, style, mod_w, mod_b, conv_w, conv_b):
    """Pure-JAX f32 reference mirroring the PyTorch module."""
    B, Cin, H, W = x.shape
    Dstyle = style.shape[1]
    K = conv_w.shape[-1]
    s = style @ (mod_w * (1.0 / math.sqrt(Dstyle))).T + mod_b       # (B, Cin)
    xm = x * s.reshape(B, Cin, 1, 1)
    out = jax.lax.conv_general_dilated(
        xm, conv_w, window_strides=(1, 1),
        padding=[(K // 2, K // 2), (K // 2, K // 2)],
        dimension_numbers=("NCHW", "OIHW", "NCHW"))
    out = out + conv_b.reshape(1, -1, 1, 1)
    return out * (1.0 / math.sqrt(Cin * K * K))


if __name__ == "__main__":
    # Small, deterministic shapes consistent with StyledConv.__init__/forward.
    B, Cin, Cout, H, W = 2, 4, 8, 16, 16
    K, Dstyle = 3, 8

    key = jax.random.PRNGKey(0)
    k_x, k_s, k_mw, k_cw, k_cb = jax.random.split(key, 5)

    x = jax.random.normal(k_x, (B, Cin, H, W), jnp.float32)
    style = jax.random.normal(k_s, (B, Dstyle), jnp.float32)

    # EqualLinear(style_dim, in_channels): weight (Cin, Dstyle) ~ randn, bias zeros.
    mod_w = jax.random.normal(k_mw, (Cin, Dstyle), jnp.float32)
    mod_b = jnp.zeros((Cin,), jnp.float32)
    # Conv2d(in, out, K): weight (Cout, Cin, K, K), bias (Cout,).
    conv_w = jax.random.normal(k_cw, (Cout, Cin, K, K), jnp.float32) * 0.1
    conv_b = jax.random.normal(k_cb, (Cout,), jnp.float32) * 0.1

    out = styled_conv(x, style, mod_w, mod_b, conv_w, conv_b)
    out = jax.block_until_ready(out)

    ref = _reference(x, style, mod_w, mod_b, conv_w, conv_b)
    # Tolerance loosened vs. v1 because the MXU operands are cast to bf16
    # (f32 accumulation); observed error is ~1e-3.
    np.testing.assert_allclose(np.asarray(out), np.asarray(ref),
                               rtol=2e-2, atol=2e-2)
    print("KERNEL_OK")
</pallas_src>

<mosaic_0001>
module attributes {stable_mosaic.version = 11 : i64} {
  func.func @_styled_conv_kernel(%arg0: i32, %arg1: memref<1x1x36xf32, #tpu.memory_space<vmem>>, %arg2: memref<1x36x256xbf16, #tpu.memory_space<vmem>>, %arg3: memref<8x36xf32, #tpu.memory_space<vmem>>, %arg4: memref<8x1xf32, #tpu.memory_space<vmem>>, %arg5: memref<1x8x256xf32, #tpu.memory_space<vmem>>) attributes {dimension_semantics = [#tpu.dimension_semantics<parallel>], iteration_bounds = array<i64: 2>, scalar_prefetch = 0 : i64, scratch_operands = 0 : i64, tpu.core_type = #tpu.core_type<tc>, window_params = [{transform_indices = @transform_0, window_bounds = array<i64: 1, 1, 36>}, {transform_indices = @transform_1, window_bounds = array<i64: 1, 36, 256>}, {pipeline_mode = #tpu.pipeline_mode<synchronous>, transform_indices = @transform_2, window_bounds = array<i64: 8, 36>}, {pipeline_mode = #tpu.pipeline_mode<synchronous>, transform_indices = @transform_3, window_bounds = array<i64: 8, 1>}, {transform_indices = @transform_4, window_bounds = array<i64: 1, 8, 256>}]} {
    %c0 = arith.constant 0 : index
    %c0_0 = arith.constant 0 : index
    %0 = vector.load %arg3[%c0, %c0_0] : memref<8x36xf32, #tpu.memory_space<vmem>>, vector<8x36xf32>
    %c0_1 = arith.constant 0 : index
    %c0_2 = arith.constant 0 : index
    %c0_3 = arith.constant 0 : index
    %1 = vector.load %arg1[%c0_1, %c0_2, %c0_3] : memref<1x1x36xf32, #tpu.memory_space<vmem>>, vector<1x1x36xf32>
    %2 = vector.shape_cast %1 : vector<1x1x36xf32> to vector<1x36xf32>
    %3 = vector.broadcast %2 : vector<1x36xf32> to vector<8x36xf32>
    %4 = arith.mulf %0, %3 : vector<8x36xf32>
    %5 = arith.truncf %4 : vector<8x36xf32> to vector<8x36xbf16>
    %c0_4 = arith.constant 0 : index
    %c0_5 = arith.constant 0 : index
    %c0_6 = arith.constant 0 : index
    %6 = vector.load %arg2[%c0_4, %c0_5, %c0_6] : memref<1x36x256xbf16, #tpu.memory_space<vmem>>, vector<1x36x256xbf16>
    %7 = vector.shape_cast %6 : vector<1x36x256xbf16> to vector<36x256xbf16>
    %cst = arith.constant dense<0.000000e+00> : vector<8x256xf32>
    %8 = tpu.matmul %5, %7, %cst {dimension_numbers = #tpu.dot_dimension_numbers<[1], [0], [0], [1], [0, 0, 1, 1], [], []>} : vector<8x36xbf16>, vector<36x256xbf16>, vector<8x256xf32> -> vector<8x256xf32>
    %c0_7 = arith.constant 0 : index
    %c0_8 = arith.constant 0 : index
    %9 = vector.load %arg4[%c0_7, %c0_8] : memref<8x1xf32, #tpu.memory_space<vmem>>, vector<8x1xf32>
    %10 = vector.broadcast %9 : vector<8x1xf32> to vector<8x256xf32>
    %11 = arith.addf %8, %10 : vector<8x256xf32>
    %c0_9 = arith.constant 0 : index
    %c0_10 = arith.constant 0 : index
    %c0_11 = arith.constant 0 : index
    %12 = vector.load %arg5[%c0_9, %c0_10, %c0_11] : memref<1x8x256xf32, #tpu.memory_space<vmem>>, vector<1x8x256xf32>
    %13 = vector.shape_cast %12 : vector<1x8x256xf32> to vector<8x256xf32>
    %14 = vector.shape_cast %11 : vector<8x256xf32> to vector<1x8x256xf32>
    tpu.vector_store %arg5[%c0_9, %c0_10, %c0_11], %14 {strides = array<i32>} : memref<1x8x256xf32, #tpu.memory_space<vmem>>, vector<1x8x256xf32>,
    return
  }
  func.func @transform_0(%arg0: i32) -> (i32, i32, i32) {
    %c0_i32 = arith.constant 0 : i32
    %c0_i32_0 = arith.constant 0 : i32
    %c0_i32_1 = arith.constant 0 : i32
    return %arg0, %c0_i32, %c0_i32_0 : i32, i32, i32
  }
  func.func @transform_1(%arg0: i32) -> (i32, i32, i32) {
    %c0_i32 = arith.constant 0 : i32
    %c0_i32_0 = arith.constant 0 : i32
    %c0_i32_1 = arith.constant 0 : i32
    return %arg0, %c0_i32, %c0_i32_0 : i32, i32, i32
  }
  func.func @transform_2(%arg0: i32) -> (i32, i32) {
    %c0_i32 = arith.constant 0 : i32
    %c0_i32_0 = arith.constant 0 : i32
    %c0_i32_1 = arith.constant 0 : i32
    return %c0_i32, %c0_i32_0 : i32, i32
  }
  func.func @transform_3(%arg0: i32) -> (i32, i32) {
    %c0_i32 = arith.constant 0 : i32
    %c0_i32_0 = arith.constant 0 : i32
    %c0_i32_1 = arith.constant 0 : i32
    return %c0_i32, %c0_i32_0 : i32, i32
  }
  func.func @transform_4(%arg0: i32) -> (i32, i32, i32) {
    %c0_i32 = arith.constant 0 : i32
    %c0_i32_0 = arith.constant 0 : i32
    %c0_i32_1 = arith.constant 0 : i32
    return %arg0, %c0_i32, %c0_i32_0 : i32, i32, i32
  }
}

</mosaic_0001>

<bundles_post_ra>
// kernel: tpu_custom_call.1
= control target key start
LH: loop header
LB: loop body
LE: loop exit
PB: predicated region body
PF: predicated region fallthrough
CT: control target
= control target key end

     0   :  { %9 = vsyncpa [#allocation3], 0  ;;  %s665_s0 = inlined_call_operand.vmem [shape: f32[2,1,36], index: 0, kind: input, shape index: {}]   ;;  %s666_s1 = inlined_call_operand.vmem [shape: bf16[2,36,256], index: 1, kind: input, shape index: {}]   ;;  %s667_s2 = inlined_call_operand.vmem [shape: f32[8,36], index: 2, kind: input, shape index: {}]   ;;  %s668_s3 = inlined_call_operand.vmem [shape: f32[8,1], index: 3, kind: input, shape index: {}]   ;;  %s669_s4 = inlined_call_operand.hbm [shape: f32[2,8,256], index: 4, kind: output, shape index: {}]  }
   0x1   :  { %11 = vsyncpa [#allocation3 + $0x1], 0  ;;  %s556_s15 = smov 0   ;;  %s558_s16 = smov 0  }
   0x2   :  { %s560_s17 = smov 0   ;;  %s562_s18 = smov 0  }
   0x3 LB: > { %s577_s19 = sadd.s32 4294967295, %s527_s18   ;;  %s394_s20 = sadd.s32 4294967294, %s527_s18   ;;  %s527_s18 = sphi %s562_s18, %s675_s18   ;;  %s523_s17 = sphi %s560_s17, %s674_s17   ;;  %s519_s16 = sphi %s558_s16, %s673_s16   ;;  %s515_s15 = sphi %s556_s15, %s672_s15  }
   0x4   : > { %s581_s21 = sadd.s32 1, %s527_s18   ;;  %s118_s22 = sadd.s32 1, %s523_s17 }
   0x5   : > { %s115_s23 = ssub.s32 %s527_s18, %s581_s21  ;;  %p128_p0 = scmp.ne.s32.totalorder %s523_s17, %s519_s16 }
   0x6   : > { %p116_p1 = scmp.eq.s32.totalorder %s115_s23, 0  ;;  %p129_p2 = scmp.eq.s32.totalorder %s577_s19, 1 }
   0x7   : > { %p134_p3 = scmp.ne.s32.totalorder %s519_s16, %s515_s15  ;;  %p135_p4 = scmp.eq.s32.totalorder %s394_s20, 1 }
   0x8   : > { %s592_s24 = scalar_select %p116_p1, %s523_s17, %s118_s22  }
   0x9   : > { %p594_p5 = por %p129_p2, %p128_p0  ;;  %p598_p6 = por %p135_p4, %p134_p3 }
   0xa   : > { %p397_p7 = scmp.ge.s32.totalorder %s527_s18, 1  ;;  %p173_p8 = scmp.lt.s32.totalorder %s527_s18, 3 }
   0xc   : > { %p174_p9 = pnand %p397_p7, %p173_p8 }
   0xd   : > { %p202_p10 = scmp.lt.s32.totalorder (!%p174_p9), %s577_s19, 1  ;;  %v226_v0 = vld [vmem:[%s668_s3] sm:$0xff] (!%p174_p9)  ;;  %v529_v1 = vmov (!%p174_p9), 0   ;;  %vm261_vm0 = vcmask (!%p174_p9), 1041408   ;;  %vm257_vm1 = vcmask (!%p174_p9), 293888   ;;  %s199_s13 = sand.u32 (!%p174_p9), 1, %s519_s16  }
   0xe   : > { %177 = sbr.rel (%p174_p9) target bundleno = 268 (0x10c), region = 36  ;;  %300 = vmatprep.mubr.bf16.mxu0 (!%p174_p9), %v529_v1  ;;  %456 = vset.pattern.permute.xlu0 (!%p174_p9), %v529_v1  ;;  %v211_v7 = vld [vmem:[%s667_s2] sm:$0xff] (!%p174_p9)  ;;  %s398_s14 = sshll.u32 (!%p174_p9), %s199_s13, 4 }
   0xf   : > { %229 = vperm.xlu0 (!%p174_p9), %456, %v226_v0   ;;  %s414_s20 = sshll.u32 (!%p174_p9), %s577_s19, 8  ;;  %s201_s22 = scalar_lea.vmem (!%p174_p9), [#allocation2], %s398_s14 }
  0x10   : > { %s326_s23 = sshll.u32 (!%p174_p9), %s201_s22, 4  ;;  %s530_s5 = smov (!%p174_p9), [#allocation2]   ;;  %s625_s23 = int_to_ptr.vmem [resolvable:$true] %s326_s23 }
  0x11   : > { %s469_s6 = sshll.u32 (!%p174_p9), %s530_s5, 4  ;;  %s470_s6 = int_to_ptr.vmem [resolvable:$false] %s469_s6 }
  0x12   : > { %p472_p0 = scmp.lt.s32.totalorder (!%p174_p9), %s625_s23, %s470_s6 }
  0x15   : > { %s203_s29 = scalar_select %p202_p10, %s577_s19, 1 }
  0x16   : > { %s312_s19 = scalar_lea.sflag [#allocation3], %s199_s13 }
  0x17   : > { %s415_s30 = smul.u32 40, %s203_s29  ;;  %s204_s10 = scalar_lea.vmem %s665_s0, %s203_s29 }
  0x18   : > { %v400_v8 = vld [vmem:[%s204_s10] ss:$0 sm:$0xff]  ;;  %s623_s29 = scalar_lea.hbm %s669_s4, %s414_s20 }
  0x19   : > { %s209_s7 = scalar_lea.vmem %s666_s1, %s415_s30  ;;  %v219_v11 = vmul.f32 %v400_v8, %v211_v7  ;;  %s465_s30 = scalar_lea.vmem %s625_s23, 256 }
  0x1a   : > { %v457_v2 = vld [vmem:[%s209_s7 + $0x4] ss:$8 sps:$4 sm:$0xff]   ;;  %v459_v3 = vld [vmem:[%s209_s7] ss:$8 sps:$4 sm:$0xff]   ;;  %v460_v4 = vld [vmem:[%s209_s7 + $0x14] ss:$8 sps:$4 sm:$0xff]   ;;  %p466_p11 = scmp.ne.s32.totalorder %s625_s23, %s465_s30 }
  0x1b   : > { %268 = vmatprep.subr.bf16.mxu0 %v457_v2  ;;  %v225_v5 = vld [vmem:[%s209_s7 + $0x20] sm:$0x33]  ;;  %v462_v6 = vld [vmem:[%s209_s7 + $0x10] ss:$8 sps:$4 sm:$0xff]   ;;  %v220_v13 = vpack.c.bf16 %v219_v11, %v219_v11  ;;  %s471_s7 = scalar_lea.vmem %s470_s6, 512 }
  0x1c   : > { %269 = vmatpush1.bf16.msra.mxu0 %v459_v3  ;;  %v406_v9 = vcombine.high %v225_v5, %v225_v5  ;;  %v405_v10 = vcombine.low %v225_v5, %v225_v5  ;;  %p467_p12 = pnand %p466_p11, %p594_p5  ;;  %p473_p1 = scmp.lt.s32.totalorder %s471_s7, %s465_s30 }
  0x1d   : > { %270 = vmatprep.subr.bf16.mxu0 %v460_v4 }
  0x1e   : > { %v263_v12 = vsel %vm261_vm0, %v405_v10, 0  ;;  %p468_p13 = pneg %p467_p12  ;;  %p474_p2 = por %p473_p1, %p472_p0 }
  0x20   : > { %271 = vmatpush1.bf16.msra.mxu0 %v462_v6  ;;  %p475_p3 = pnand %p474_p2, %p468_p13 }
  0x21   : > { %407 = vmatprep.subr.msk.bf16.mxu0 %vm261_vm0, %v406_v9 }
  0x24   : > { %273 = vmatpush1.bf16.msra.mxu0 %v263_v12 }
  0x27   : > { %408 = vmatmul.mubr.msk.bf16.vlgmr.msra.gmra.mrb[0].mxu0 %vm257_vm1, %v220_v13 }
  0x8e   : > { %v230_v14 = vpop.permute.xlu0 %229 }
  0xfa   : > { %v302_v15 = vpop.f32.mrb[0].mxu0 }
  0xfb   : > { %v303_v16 = vadd.f32 %v302_v15, %v230_v14  ;;  %v304_v17 = vpop.f32.mrb[1].mxu0 }
  0xfc   : > { %v305_v18 = vadd.f32 %v304_v17, %v230_v14  ;;  %v306_v19 = vpop.f32.mrb[2].mxu0 }
  0xfd   : > { %309 = vst [vmem:[%s201_s22] sm:$0xff] %v303_v16  ;;  %v307_v20 = vpop.f32.mrb[3].mxu0 }
  0xfe   : > { %310 = vst [vmem:[%s201_s22 + $0x8] sm:$0xff] %v305_v18 }
  0xff   : > { %478 = shalt.err (!%p475_p3)
}
 0x100   : > { %s479_s8 = scalar_lea.hbm %s623_s29, 256  ;;  %s483_s11 = scalar_lea.hbm %s669_s4, 512 }
 0x101   : > { %p480_p4 = scmp.ne.s32.totalorder %s623_s29, %s479_s8  ;;  %p484_p9 = scmp.lt.u32.totalorder %s623_s29, %s669_s4 }
 0x102   : > { %p485_p10 = scmp.lt.u32.totalorder %s483_s11, %s479_s8  ;;  %p487_p12 = scmp.lt.u32.totalorder %s479_s8, %s623_s29 }
 0x103   : > { %p481_p7 = pnand %p480_p4, %p594_p5 }
 0x104   : > { %p486_p11 = por %p485_p10, %p484_p9 }
 0x105   : > { %p482_p8 = pneg %p481_p7 }
 0x106   : > { %p488_p13 = por %p487_p12, %p486_p11 }
 0x108   : > { %p489_p0 = pnand %p488_p13, %p482_p8 }
 0x10a   : > { %492 = shalt.err (!%p489_p0)
}
 0x10b   : > { %416 = dma.vmem_to_hbm [thread:$0]  (%p594_p5), %s625_s23, 256, %s623_s29, %s312_s19  }
 0x10c PF: > { %p422_p1 = scmp.ge.s32.totalorder %s527_s18, 2  ;;  %s338_s14 = sand.u32 1, %s515_s15  }
 0x10d   : > { %s339_s20 = scalar_lea.sflag [#allocation3], %s338_s14 }
 0x10e   : > { %p419_p2 = pnand %p422_p1, %p598_p6 }
 0x110   : > { %510 = dma.done.wait (!%p419_p2), %s339_s20, 256  }
 0x111   : > { %512 = vsyncadd (!%p419_p2), %s339_s20, 4294967040  ;;  %p14_p3 = scmp.ge.s32.totalorder %s581_s21, 4   ;;  %s672_s15 = smov %s519_s16 }
 0x112   : > { %s673_s16 = smov %s523_s17  ;;  %s674_s17 = smov %s592_s24 }
 0x113   : > { %s675_s18 = smov %s581_s21  ;;  %16 = sbr.rel (!%p14_p3) target bundleno = 3 (0x3), region = 74 }
 0x11a   :  { %344 = vsyncpa [#allocation3], 1 }
 0x11b   :  { %346 = vsyncpa [#allocation3 + $0x1], 1 }

</bundles_post_ra>
